<compile_context>
chip_gen: v7x
topology: tpu7x:2x2x1
jax: 0.10.0
libtpu: 0.0.40
codegen_flags: <defaults>
</compile_context>

<pallas_src>
import functools

import jax
import jax.numpy as jnp
from jax.experimental import pallas as pl
from jax.experimental.pallas import tpu as pltpu


# ----------------------------------------------------------------------------
# Host-side planning helpers.
# ----------------------------------------------------------------------------
def _cdiv(a, b):
    return -(-a // b)


def _round_up(a, m):
    return _cdiv(a, m) * m


def _lowest(dtype):
    dtype = jnp.dtype(dtype)
    if jnp.issubdtype(dtype, jnp.floating):
        return jnp.asarray(jnp.finfo(dtype).min, dtype)
    return jnp.asarray(jnp.iinfo(dtype).min, dtype)


def _vmem_plan():
    """Returns (per-buffer tile budget, vmem_limit_bytes, input buffer count)."""
    phys = None
    try:
        phys = getattr(pltpu.get_tpu_info(), "vmem_capacity_bytes", None)
    except Exception:
        phys = None
    if not phys:
        phys = 64 << 20  # assume smallest (v7x-class) VMEM if the query fails
    if phys >= (96 << 20):
        # v5e / v6e: 128 MiB physical VMEM.  Bigger tiles amortize the ~0.35us
        # per-step overhead; raise the scoped limit past the 16/32 MiB defaults.
        return 12 << 20, 64 << 20, 2
    # v7x-class: 64 MiB physical VMEM, 2 TensorCores, faster HBM.  Slightly
    # smaller tiles, 3-deep input buffering to keep the HBM queue full.
    return 8 << 20, 48 << 20, 3


def _cost(n_rows, hw, itemsize):
    return pl.CostEstimate(
        flops=n_rows * hw,  # one compare/max per element
        transcendentals=0,
        bytes_accessed=(n_rows * hw + n_rows) * itemsize,
    )


def _in_spec(block_shape, index_map, num_buffers):
    if num_buffers > 2:
        return pl.BlockSpec(block_shape, index_map,
                            pipeline_mode=pl.Buffered(num_buffers))
    return pl.BlockSpec(block_shape, index_map)


def _pick_row_tile(n_rows, bytes_per_row, target_bytes, granule, min_tiles=4):
    """Row-tile size: a multiple of `granule` (or n_rows itself) that fits the
    padded-byte budget and leaves >= min_tiles (or at least 2) grid steps so
    the 'parallel' row axis can shard across both v7x TensorCores."""
    if n_rows <= granule:
        return n_rows
    fit = max(granule, (target_bytes // bytes_per_row) // granule * granule)
    cap_pref = _round_up(_cdiv(n_rows, min_tiles), granule)
    cap_min = _round_up(_cdiv(n_rows, 2), granule)
    if cap_pref < n_rows:
        cap = cap_pref
    elif cap_min < n_rows:
        cap = cap_min
    else:
        cap = n_rows
    tile = min(fit, cap)
    return n_rows if tile >= n_rows else tile


# ----------------------------------------------------------------------------
# Kernels.
# ----------------------------------------------------------------------------
def _rowmax_whole_kernel(x_ref, o_ref):
    """hw fits in one block: (tn, hw) -> lane-dense (1, tn)."""
    o_ref[...] = jnp.max(x_ref[...], axis=-1)[None, :]


def _rowmax_split_kernel(x_ref, o_ref, acc_ref, *, hw, thw, mask_tail):
    """hw split across grid axis 1; thw % 128 == 0.

    Each step folds its thw lanes into a (tn, 128) VMEM accumulator with pure
    VPU maxima; the XLU cross-lane reduce and the (tn,) -> (1, tn) relayout run
    once, on the last hw step.  Tails of a non-128-multiple hw are masked with
    the dtype's lowest value so OOB padding never enters the reduction.
    """
    k = pl.program_id(1)
    n_chunks = thw // 128
    # Lanes that are still valid in the *last* hw block; chunks entirely below
    # this bound never need masking, for any k.
    last_valid = hw - (_cdiv(hw, thw) - 1) * thw
    low = _lowest(x_ref.dtype)

    def chunk(j):
        c = x_ref[:, j * 128:(j + 1) * 128]
        if mask_tail and (j + 1) * 128 > last_valid:
            lane = (jax.lax.broadcasted_iota(jnp.int32, c.shape, 1)
                    + (k * thw + j * 128))
            c = jnp.where(lane < hw, c, low)
        return c

    part = chunk(0)
    for j in range(1, n_chunks):
        part = jnp.maximum(part, chunk(j))

    @pl.when(k == 0)
    def _init():
        acc_ref[...] = part

    @pl.when(k > 0)
    def _accumulate():
        acc_ref[...] = jnp.maximum(acc_ref[...], part)

    @pl.when(k == pl.num_programs(1) - 1)
    def _finalize():
        o_ref[...] = jnp.max(acc_ref[...], axis=-1)[None, :]


def _rowmax_packed_kernel(x_ref, o_ref, *, groups, hw):
    """Lane-packed small-hw path.

    x_ref: (tn_p, groups*hw) with groups*hw == 128 (groups original rows packed
    per lane row); o_ref: lane-dense (1, tn_p*groups).
    """
    x = x_ref[...]
    tn_p = x.shape[0]
    seg_max = jnp.max(x.reshape(tn_p, groups, hw), axis=-1)  # (tn_p, groups)
    o_ref[...] = seg_max.reshape(1, tn_p * groups)


# ----------------------------------------------------------------------------
# pallas_call wrappers.
# ----------------------------------------------------------------------------
def _row_max_packed(x2, target_bytes, vmem_limit, num_buffers):
    """(n_rows, hw) -> (n_rows,) for hw < 128 with 128 % hw == 0, by packing
    G = 128 // hw rows per 128-lane row (fully lane-dense loads and stores)."""
    n_rows, hw = x2.shape
    itemsize = jnp.dtype(x2.dtype).itemsize
    groups = 128 // hw
    n_rows_p = n_rows // groups
    xp = x2.reshape(n_rows_p, groups * hw)  # free: rows are contiguous in HBM

    # granule keeps tn_p a multiple of 8 AND tn_p*groups a multiple of 128.
    tn_p = _pick_row_tile(n_rows_p, 128 * itemsize, target_bytes,
                          granule=max(8, hw))
    tn = tn_p * groups
    grid = (_cdiv(n_rows_p, tn_p),)
    nbuf = num_buffers if grid[0] >= num_buffers else 2

    out = pl.pallas_call(
        functools.partial(_rowmax_packed_kernel, groups=groups, hw=hw),
        out_shape=jax.ShapeDtypeStruct((1, n_rows), x2.dtype),
        grid_spec=pltpu.PrefetchScalarGridSpec(
            num_scalar_prefetch=0,
            grid=grid,
            in_specs=[_in_spec((tn_p, groups * hw), lambda i: (i, 0), nbuf)],
            out_specs=pl.BlockSpec((1, tn), lambda i: (0, i)),
        ),
        compiler_params=pltpu.CompilerParams(
            dimension_semantics=("parallel",),
            vmem_limit_bytes=vmem_limit,
        ),
        cost_estimate=_cost(n_rows, hw, itemsize),
    )(xp)
    return out.reshape(n_rows)


def _plan_general(n_rows, hw, itemsize, target_bytes):
    """Pick (tn, thw, num_hw_blocks, mask_tail) with padded-VMEM accounting."""
    hw_pad = _round_up(hw, 128)
    row_bytes = hw_pad * itemsize  # lane-padded bytes per row in VMEM
    min_tn = n_rows if n_rows <= 128 else 128
    if _round_up(min_tn, 8) * row_bytes <= target_bytes:
        # Whole hw per block; tile rows only.
        tn = _pick_row_tile(n_rows, row_bytes, target_bytes, granule=128)
        return tn, hw, 1, False
    # Split hw into 128-lane multiples; mask the tail if hw % thw != 0.
    tn = min_tn
    lanes_fit = target_bytes // (_round_up(tn, 8) * itemsize)
    thw = max(128, lanes_fit // 128 * 128)
    if thw >= hw:
        return tn, hw, 1, False
    return tn, thw, _cdiv(hw, thw), (hw % thw != 0)


def _row_max_general(x2, target_bytes, vmem_limit, num_buffers):
    """(n_rows, hw) -> (n_rows,) row max, tiled over rows and (optionally) hw."""
    n_rows, hw = x2.shape
    itemsize = jnp.dtype(x2.dtype).itemsize
    tn, thw, khw, mask_tail = _plan_general(n_rows, hw, itemsize, target_bytes)
    n_row_tiles = _cdiv(n_rows, tn)
    cost = _cost(n_rows, hw, itemsize)
    nbuf = num_buffers if n_row_tiles * khw >= num_buffers else 2

    if khw == 1:
        out = pl.pallas_call(
            _rowmax_whole_kernel,
            out_shape=jax.ShapeDtypeStruct((1, n_rows), x2.dtype),
            grid_spec=pltpu.PrefetchScalarGridSpec(
                num_scalar_prefetch=0,
                grid=(n_row_tiles,),
                in_specs=[_in_spec((tn, thw), lambda i: (i, 0), nbuf)],
                out_specs=pl.BlockSpec((1, tn), lambda i: (0, i)),
            ),
            compiler_params=pltpu.CompilerParams(
                dimension_semantics=("parallel",),
                vmem_limit_bytes=vmem_limit,
            ),
            cost_estimate=cost,
        )(x2)
    else:
        out = pl.pallas_call(
            functools.partial(_rowmax_split_kernel, hw=hw, thw=thw,
                              mask_tail=mask_tail),
            out_shape=jax.ShapeDtypeStruct((1, n_rows), x2.dtype),
            grid_spec=pltpu.PrefetchScalarGridSpec(
                num_scalar_prefetch=0,
                grid=(n_row_tiles, khw),
                in_specs=[_in_spec((tn, thw), lambda i, k: (i, k), nbuf)],
                out_specs=pl.BlockSpec((1, tn), lambda i, k: (0, i)),
                scratch_shapes=[pltpu.VMEM((tn, 128), x2.dtype)],
            ),
            compiler_params=pltpu.CompilerParams(
                # rows independent -> megacore-shardable; hw is the reduction
                # whose output block is revisited -> arbitrary, and last.
                dimension_semantics=("parallel", "arbitrary"),
                vmem_limit_bytes=vmem_limit,
            ),
            cost_estimate=cost,
        )(x2)
    return out.reshape(n_rows)


def _row_max(x2, *, tile_target_bytes=None):
    """Tiled Pallas row-wise max: (n_rows, hw) -> (n_rows,)."""
    n_rows, hw = x2.shape
    target, vmem_limit, num_buffers = _vmem_plan()
    if tile_target_bytes is not None:
        target = tile_target_bytes

    groups = 128 // hw if (1 < hw < 128 and 128 % hw == 0) else 0
    if groups and n_rows % groups == 0:
        try:
            return _row_max_packed(x2, target, vmem_limit, num_buffers)
        except Exception:
            # The packed kernel relies on in-kernel relayouts (lane-splitting
            # reshapes); if this toolchain rejects them, fall back to the
            # general (lane-sparse but correct, padded-byte-accounted) path.
            pass
    return _row_max_general(x2, target, vmem_limit, num_buffers)


# ----------------------------------------------------------------------------
# Public API.
# ----------------------------------------------------------------------------
def global_max_pool_nchw(x, *, tile_target_bytes=None):
    """General NCHW global max pool: (b, c, h, w) -> (b, c)."""
    assert x.ndim == 4, x.shape
    b, c, h, w = x.shape
    x2 = x.reshape(b * c, h * w)  # glue reshape, no data movement
    return _row_max(x2, tile_target_bytes=tile_target_bytes).reshape(b, c)


def global_max_pool2d(x):
    """Faithful GlobalMaxPool2d.forward: (b, c, h, w) -> (b, h*w).

    The h == w / c == h*w requirements are artifacts of the PyTorch module
    (F.max_pool2d(x, (w, h)).view(b, h*w)); they only live in this thin
    wrapper -- the kernel path is shape-general.
    """
    assert x.ndim == 4, x.shape
    b, c, h, w = x.shape
    assert h == w, (h, w)
    assert c == h * w, (c, h, w)
    return global_max_pool_nchw(x).reshape(b, h * w)


if __name__ == "__main__":
    key = jax.random.PRNGKey(0)

    # 1) Module-faithful shape: h = w = 4 -> c = h*w = 16.  Exercises the
    #    lane-packed small-hw path (hw = 16, G = 8 rows per 128-lane row).
    b, h, w = 2, 4, 4
    c = h * w
    x = jax.random.normal(key, (b, c, h, w), dtype=jnp.float32)
    y = jax.block_until_ready(global_max_pool2d(x))
    y_ref = jnp.max(x, axis=(2, 3)).reshape(b, h * w)
    assert y.shape == (b, h * w), y.shape
    assert jnp.allclose(y, y_ref), "mismatch vs reference (packed small-hw)"

    # 2) hw >= 128 kept whole in a single block (general path, 1-D grid).
    x2 = jax.random.normal(jax.random.PRNGKey(1), (2, 4, 16, 16), jnp.float32)
    y2 = jax.block_until_ready(global_max_pool_nchw(x2))
    assert jnp.allclose(y2, jnp.max(x2, axis=(2, 3))), "mismatch (whole-hw)"

    # 3) Small per-tile budget -> multiple row tiles AND an hw split: exercises
    #    the (tn, 128) scratch accumulator / pl.when finalize path.
    x3 = jax.random.normal(jax.random.PRNGKey(2), (2, 256, 16, 16), jnp.float32)
    y3 = jax.block_until_ready(
        global_max_pool_nchw(x3, tile_target_bytes=64 * 1024))
    assert jnp.allclose(y3, jnp.max(x3, axis=(2, 3))), "mismatch (split hw)"

    # 4) hw = 324 (not a multiple of 128) with a forced split: exercises the
    #    in-kernel tail masking with the dtype's lowest value.
    x4 = jax.random.normal(jax.random.PRNGKey(3), (2, 8, 18, 18), jnp.float32)
    y4 = jax.block_until_ready(
        global_max_pool_nchw(x4, tile_target_bytes=16 * 1024))
    assert jnp.allclose(y4, jnp.max(x4, axis=(2, 3))), "mismatch (masked tail)"

    print("KERNEL_OK")
</pallas_src>

<mosaic_0001>
module attributes {stable_mosaic.version = 11 : i64} {
  func.func @_rowmax_packed_kernel(%arg0: i32, %arg1: memref<4x128xf32, #tpu.memory_space<vmem>>, %arg2: memref<1x32xf32, #tpu.memory_space<vmem>>) attributes {dimension_semantics = [#tpu.dimension_semantics<parallel>], iteration_bounds = array<i64: 1>, scalar_prefetch = 0 : i64, scratch_operands = 0 : i64, tpu.core_type = #tpu.core_type<tc>, window_params = [{transform_indices = @transform_0, window_bounds = array<i64: 4, 128>}, {transform_indices = @transform_1, window_bounds = array<i64: 1, 32>}]} {
    %c0 = arith.constant 0 : index
    %c0_0 = arith.constant 0 : index
    %0 = vector.load %arg1[%c0, %c0_0] : memref<4x128xf32, #tpu.memory_space<vmem>>, vector<4x128xf32>
    %1 = vector.shape_cast %0 : vector<4x128xf32> to vector<4x8x16xf32>
    %cst = arith.constant dense<0xFF800000> : vector<4x8xf32>
    %2 = vector.multi_reduction <maximumf>, %1, %cst [2] : vector<4x8x16xf32> to vector<4x8xf32>
    %3 = vector.shape_cast %2 : vector<4x8xf32> to vector<1x32xf32>
    %c0_1 = arith.constant 0 : index
    %c0_2 = arith.constant 0 : index
    %4 = vector.load %arg2[%c0_1, %c0_2] : memref<1x32xf32, #tpu.memory_space<vmem>>, vector<1x32xf32>
    tpu.vector_store %arg2[%c0_1, %c0_2], %3 {strides = array<i32>} : memref<1x32xf32, #tpu.memory_space<vmem>>, vector<1x32xf32>,
    return
  }
  func.func @transform_0(%arg0: i32) -> (i32, i32) {
    %c0_i32 = arith.constant 0 : i32
    %c0_i32_0 = arith.constant 0 : i32
    return %arg0, %c0_i32 : i32, i32
  }
  func.func @transform_1(%arg0: i32) -> (i32, i32) {
    %c0_i32 = arith.constant 0 : i32
    %c0_i32_0 = arith.constant 0 : i32
    return %c0_i32, %arg0 : i32, i32
  }
}

module attributes {stable_mosaic.version = 11 : i64} {
  func.func @_rowmax_whole_kernel(%arg0: i32, %arg1: memref<32x16xf32, #tpu.memory_space<vmem>>, %arg2: memref<1x32xf32, #tpu.memory_space<vmem>>) attributes {dimension_semantics = [#tpu.dimension_semantics<parallel>], iteration_bounds = array<i64: 1>, scalar_prefetch = 0 : i64, scratch_operands = 0 : i64, tpu.core_type = #tpu.core_type<tc>, window_params = [{transform_indices = @transform_0, window_bounds = array<i64: 32, 16>}, {transform_indices = @transform_1, window_bounds = array<i64: 1, 32>}]} {
    %c0 = arith.constant 0 : index
    %c0_0 = arith.constant 0 : index
    %0 = vector.load %arg1[%c0, %c0_0] : memref<32x16xf32, #tpu.memory_space<vmem>>, vector<32x16xf32>
    %cst = arith.constant dense<0xFF800000> : vector<32xf32>
    %1 = vector.multi_reduction <maximumf>, %0, %cst [1] : vector<32x16xf32> to vector<32xf32>
    %2 = vector.shape_cast %1 : vector<32xf32> to vector<1x32xf32>
    %c0_1 = arith.constant 0 : index
    %c0_2 = arith.constant 0 : index
    %3 = vector.load %arg2[%c0_1, %c0_2] : memref<1x32xf32, #tpu.memory_space<vmem>>, vector<1x32xf32>
    tpu.vector_store %arg2[%c0_1, %c0_2], %2 {strides = array<i32>} : memref<1x32xf32, #tpu.memory_space<vmem>>, vector<1x32xf32>,
    return
  }
  func.func @transform_0(%arg0: i32) -> (i32, i32) {
    %c0_i32 = arith.constant 0 : i32
    %c0_i32_0 = arith.constant 0 : i32
    return %arg0, %c0_i32 : i32, i32
  }
  func.func @transform_1(%arg0: i32) -> (i32, i32) {
    %c0_i32 = arith.constant 0 : i32
    %c0_i32_0 = arith.constant 0 : i32
    return %c0_i32, %arg0 : i32, i32
  }
}

</mosaic_0001>

<bundles_post_ra>
// kernel: tpu_custom_call.1
= control target key start
LH: loop header
LB: loop body
LE: loop exit
PB: predicated region body
PF: predicated region fallthrough
CT: control target
= control target key end

     0   :  { %6 = vsyncpa [#allocation3], 0  ;;  %s278_s0 = inlined_call_operand.hbm [shape: f32[4,128], index: 0, kind: input, shape index: {}]   ;;  %s279_s1 = inlined_call_operand.hbm [shape: f32[1,32], index: 1, kind: output, shape index: {}]  }
   0x1   :  { %7 = vsyncpa [#allocation4], 0  ;;  %s233_s6 = smov [#allocation2]   ;;  %s185_s10 = scalar_lea.hbm %s278_s0, 64 }
   0x2   :  { %s14_s7 = sshll.u32 %s233_s6, 4  ;;  %p186_p0 = scmp.ne.s32.totalorder %s278_s0, %s185_s10  ;;  %s15_s7 = int_to_ptr.vmem [resolvable:$true] %s14_s7 }
   0x3   :  { %p189_p1 = scmp.lt.u32.totalorder %s185_s10, %s278_s0 }
   0x5   :  { %p191_p2 = pnand %p189_p1, %p186_p0 }
   0x7   :  { %194 = shalt.err (!%p191_p2)
}
   0x8   :  { %s195_s15 = scalar_lea.vmem %s15_s7, 64  ;;  %p200_p4 = scmp.lt.s32.totalorder %s15_s7, %s15_s7 }
   0x9   :  { %p196_p3 = scmp.ne.s32.totalorder %s15_s7, %s195_s15  ;;  %p201_p5 = scmp.lt.s32.totalorder %s195_s15, %s195_s15 }
   0xb   :  { %p202_p6 = por %p201_p5, %p200_p4 }
   0xd   :  { %p203_p7 = pnand %p202_p6, %p196_p3 }
   0xf   :  { %206 = shalt.err (!%p203_p7)
}
  0x10   :  { %17 = dma.hbm_to_vmem [thread:$0]  %s278_s0, 64, %s15_s7, [#allocation3]  }
  0x11   :  { %229 = dma.done.wait [#allocation3], 64  }
  0x12   :  { %230 = vsyncadd [#allocation3], 4294967232  ;;  %v21_v0 = vld [vmem:[#allocation2] sm:$0xf]  ;;  %s234_s18 = smov 80   ;;  %s235_s19 = smov 112   ;;  %v48_v5 = vlaneseq }
  0x13   :  { %29 = vrot.lane.b32.xlu1 %v21_v0, %s234_s18  ;;  %23 = vrot.lane.b32.xlu0 %v21_v0, %s235_s19  ;;  %s236_s20 = smov 64   ;;  %s237_s21 = smov 96   ;;  %v241_v3 = vmov 1983009808   ;;  %v242_v11 = vmov 1934713408  }
  0x14   :  { %s238_s22 = smov 32   ;;  %s239_s23 = smov 48   ;;  %v46_v4 = vunpack.c.l.s4 %v241_v3  ;;  %v49_v9 = vshrl.u32 %v48_v5, 7  ;;  %v79_v12 = vunpack.c.l.s4 %v242_v11  ;;  %vm112_vm0 = vcmask 130048  }
  0x15   :  { %s240_s24 = smov 16   ;;  %v130_v42 = vand.u32 127, %v48_v5  ;;  %vm140_vm1 = vcmask 130112   ;;  %vm147_vm2 = vcmask 195712   ;;  %s243_s0 = smov [#allocation5]   ;;  %vm154_vm3 = vcmask 261312  }
  0x16   :  { %v47_v8 = vunpack.c.0.s8 %v46_v4  ;;  %v80_v19 = vunpack.c.0.s8 %v79_v12  ;;  %s165_s25 = sshll.u32 %s243_s0, 4  ;;  %vm157_vm4 = vcmask 253952   ;;  %s166_s25 = int_to_ptr.vmem [resolvable:$true] %s165_s25 }
  0x17   :  { %32 = vrot.lane.b32.xlu1 %v21_v0, %s236_s20  ;;  %26 = vrot.lane.b32.xlu0 %v21_v0, %s237_s21  ;;  %v135_v43 = vadd.s32 4294967288, %v130_v42  ;;  %v142_v44 = vadd.s32 4294967280, %v130_v42  ;;  %v149_v45 = vadd.s32 4294967272, %v130_v42  ;;  %v133_v47 = vsub.s32 %v130_v42, %v49_v9  ;;  %s207_s26 = scalar_lea.vmem %s166_s25, 16  ;;  %s211_s27 = scalar_lea.vmem %s166_s25, 32 }
  0x18   :  { %v50_v15 = vsub.s32 %v47_v8, %v49_v9  ;;  %v83_v26 = vsub.s32 %v80_v19, %v49_v9  ;;  %p208_p8 = scmp.ne.s32.totalorder %s166_s25, %s207_s26  ;;  %p212_p9 = scmp.lt.s32.totalorder %s166_s25, %s166_s25 }
  0x19   :  { %v138_v46 = vsub.s32 %v135_v43, %v49_v9  ;;  %v145_v50 = vsub.s32 %v142_v44, %v49_v9  ;;  %v152_v51 = vsub.s32 %v149_v45, %v49_v9  ;;  %p213_p10 = scmp.lt.s32.totalorder %s211_s27, %s207_s26 }
  0x1b   :  { %38 = vrot.lane.b32.xlu1 %v21_v0, %s238_s22  ;;  %35 = vrot.lane.b32.xlu0 %v21_v0, %s239_s23  ;;  %p214_p11 = por %p213_p10, %p212_p9 }
  0x1d   :  { %p215_p12 = pnand %p214_p11, %p208_p8 }
  0x1f   :  { %41 = vrot.lane.b32.xlu0 %v21_v0, %s240_s24 }
  0x85   :  { %v30_v1 = vpop.permute.xlu1 %29  ;;  %v24_v2 = vpop.permute.xlu0 %23 }
  0x86   :  { %v52_v16 = vcombine.low %v24_v2, %v30_v1 }
  0x88   :  { %v59_v21 = vrot.slane %v52_v16, %v50_v15 }
  0x89   :  { %v33_v6 = vpop.permute.xlu1 %32  ;;  %v27_v7 = vpop.permute.xlu0 %26 }
  0x8a   :  { %v44_v10 = vcombine.low %v21_v0, %v27_v7 }
  0x8c   :  { %v51_v17 = vrot.slane %v44_v10, %v50_v15 }
  0x8d   :  { %v39_v13 = vpop.permute.xlu1 %38  ;;  %v36_v14 = vpop.permute.xlu0 %35 }
  0x8e   :  { %v60_v18 = vcombine.low %v33_v6, %v39_v13  ;;  %v76_v23 = vcombine.low %v51_v17, %v59_v21  ;;  %v77_v27 = vcombine.high %v51_v17, %v59_v21 }
  0x90   :  { %v67_v24 = vrot.slane %v60_v18, %v50_v15  ;;  %v84_v30 = vrot.slane %v76_v23, %v83_v26  ;;  %v91_v35 = vrot.slane %v77_v27, %v83_v26 }
  0x91   :  { %v42_v20 = vpop.permute.xlu0 %41 }
  0x92   :  { %v68_v22 = vcombine.low %v36_v14, %v42_v20 }
  0x94   :  { %v75_v25 = vrot.slane %v68_v22, %v50_v15 }
  0x96   :  { %v92_v28 = vcombine.low %v67_v24, %v75_v25  ;;  %v93_v29 = vcombine.high %v67_v24, %v75_v25 }
  0x98   :  { %v100_v31 = vrot.slane %v92_v28, %v83_v26  ;;  %v107_v32 = vrot.slane %v93_v29, %v83_v26 }
  0x9a   :  { %v109_v33 = vcombine.high %v84_v30, %v100_v31  ;;  %v108_v34 = vcombine.low %v84_v30, %v100_v31  ;;  %v110_v38 = vcombine.low %v91_v35, %v107_v32  ;;  %v111_v39 = vcombine.high %v91_v35, %v107_v32 }
  0x9c   :  { %v116_v36 = vsel %vm112_vm0, %v109_v33, -inf  ;;  %v113_v37 = vsel %vm112_vm0, %v108_v34, -inf  ;;  %v119_v40 = vsel %vm112_vm0, %v110_v38, -inf  ;;  %v122_v41 = vsel %vm112_vm0, %v111_v39, -inf }
  0x9d   :  { %117 = vmax.xlane.f32.xlu0 %v116_v36  ;;  %114 = vmax.xlane.f32.xlu1 %v113_v37 }
  0xa1   :  { %120 = vmax.xlane.f32.xlu0 %v119_v40  ;;  %123 = vmax.xlane.f32.xlu1 %v122_v41 }
 0x12a   :  { %v118_v48 = vpop.xlane.xlu0 %117  ;;  %v115_v49 = vpop.xlane.xlu1 %114 }
 0x12b   :  { %v139_v52 = vrot.slane %v118_v48, %v138_v46  ;;  %v134_v53 = vrot.slane %v115_v49, %v133_v47 }
 0x12d   :  { %v141_v58 = vsel %vm140_vm1, %v139_v52, %v134_v53 }
 0x12e   :  { %v121_v54 = vpop.xlane.xlu0 %120  ;;  %v124_v55 = vpop.xlane.xlu1 %123 }
 0x12f   :  { %v146_v56 = vrot.slane %v121_v54, %v145_v50  ;;  %v153_v57 = vrot.slane %v124_v55, %v152_v51 }
 0x131   :  { %v148_v59 = vsel %vm147_vm2, %v146_v56, %v141_v58 }
 0x132   :  { %v155_v60 = vsel %vm154_vm3, %v153_v57, %v148_v59 }
 0x133   :  { %158 = vst.msk [vmem:[#allocation5] sm:$0x1] %vm157_vm4, %v155_v60 }
 0x134   :  { %218 = shalt.err (!%p215_p12)
}
 0x135   :  { %s219_s30 = scalar_lea.hbm %s279_s1, 16 }
 0x136   :  { %p220_p13 = scmp.ne.s32.totalorder %s279_s1, %s219_s30  ;;  %p223_p0 = scmp.lt.u32.totalorder %s219_s30, %s279_s1 }
 0x138   :  { %p225_p1 = pnand %p223_p0, %p220_p13 }
 0x13a   :  { %228 = shalt.err (!%p225_p1)
}
 0x13b   :  { %168 = dma.vmem_to_hbm [thread:$0]  %s166_s25, 16, %s279_s1, [#allocation4]  }
 0x13c   :  { %231 = dma.done.wait [#allocation4], 16  }
 0x13d   :  { %232 = vsyncadd [#allocation4], 4294967280 }
 0x13e   :  { %172 = vsyncpa [#allocation3], 1 }
 0x13f   :  { %173 = vsyncpa [#allocation4], 1 }

// kernel: tpu_custom_call.1
= control target key start
LH: loop header
LB: loop body
LE: loop exit
PB: predicated region body
PF: predicated region fallthrough
CT: control target
= control target key end

     0   :  { %vm13_vm0 = vcmask 130048   ;;  %s134_s0 = inlined_call_operand.vmem [shape: f32[32,16], index: 0, kind: input, shape index: {}]   ;;  %s135_s1 = inlined_call_operand.hbm [shape: f32[1,32], index: 1, kind: output, shape index: {}]  }
   0x1   :  { %v9_v0 = vld [vmem:[%s134_s0] sm:$0xff]  ;;  %v11_v1 = vld [vmem:[%s134_s0 + $0x10] sm:$0xff]  ;;  %v10_v2 = vld [vmem:[%s134_s0 + $0x8] sm:$0xff] }
   0x2   :  { %v14_v3 = vsel %vm13_vm0, %v9_v0, -inf  ;;  %v20_v4 = vsel %vm13_vm0, %v11_v1, -inf  ;;  %v12_v5 = vld [vmem:[%s134_s0 + $0x18] sm:$0xff] }
   0x3   :  { %6 = vsyncpa [#allocation3], 0  ;;  %15 = vmax.xlane.f32.xlu0 %v14_v3  ;;  %21 = vmax.xlane.f32.xlu1 %v20_v4  ;;  %v17_v6 = vsel %vm13_vm0, %v10_v2, -inf  ;;  %v23_v7 = vsel %vm13_vm0, %v12_v5, -inf  ;;  %v30_v8 = vlaneseq  ;;  %vm41_vm1 = vcmask 130112   ;;  %s99_s0 = smov [#allocation2]  }
   0x4   :  { %vm48_vm2 = vcmask 195712   ;;  %s66_s14 = sshll.u32 %s99_s0, 4  ;;  %vm55_vm3 = vcmask 261312   ;;  %vm58_vm4 = vcmask 253952   ;;  %s67_s14 = int_to_ptr.vmem [resolvable:$true] %s66_s14 }
   0x5   :  { %v31_v9 = vand.u32 127, %v30_v8  ;;  %v33_v10 = vshrl.u32 %v30_v8, 7  ;;  %s75_s15 = scalar_lea.vmem %s67_s14, 16  ;;  %s79_s16 = scalar_lea.vmem %s67_s14, 32 }
   0x6   :  { %p76_p0 = scmp.ne.s32.totalorder %s67_s14, %s75_s15  ;;  %p80_p1 = scmp.lt.s32.totalorder %s67_s14, %s67_s14 }
   0x7   :  { %18 = vmax.xlane.f32.xlu0 %v17_v6  ;;  %24 = vmax.xlane.f32.xlu1 %v23_v7  ;;  %v36_v11 = vadd.s32 4294967288, %v31_v9  ;;  %v50_v12 = vadd.s32 4294967272, %v31_v9  ;;  %v43_v13 = vadd.s32 4294967280, %v31_v9  ;;  %v34_v16 = vsub.s32 %v31_v9, %v33_v10  ;;  %p81_p2 = scmp.lt.s32.totalorder %s79_s16, %s75_s15 }
   0x9   :  { %v39_v17 = vsub.s32 %v36_v11, %v33_v10  ;;  %v53_v18 = vsub.s32 %v50_v12, %v33_v10  ;;  %v46_v19 = vsub.s32 %v43_v13, %v33_v10  ;;  %p82_p3 = por %p81_p2, %p80_p1 }
   0xb   :  { %p83_p4 = pnand %p82_p3, %p76_p0 }
  0x90   :  { %v16_v14 = vpop.xlane.xlu0 %15  ;;  %v22_v15 = vpop.xlane.xlu1 %21 }
  0x91   :  { %v35_v22 = vrot.slane %v16_v14, %v34_v16  ;;  %v47_v25 = vrot.slane %v22_v15, %v46_v19 }
  0x94   :  { %v19_v20 = vpop.xlane.xlu0 %18  ;;  %v25_v21 = vpop.xlane.xlu1 %24 }
  0x95   :  { %v40_v23 = vrot.slane %v19_v20, %v39_v17  ;;  %v54_v24 = vrot.slane %v25_v21, %v53_v18 }
  0x97   :  { %v42_v26 = vsel %vm41_vm1, %v40_v23, %v35_v22 }
  0x98   :  { %v49_v27 = vsel %vm48_vm2, %v47_v25, %v42_v26 }
  0x99   :  { %v56_v28 = vsel %vm55_vm3, %v54_v24, %v49_v27 }
  0x9a   :  { %59 = vst.msk [vmem:[#allocation2] sm:$0x1] %vm58_vm4, %v56_v28 }
  0x9b   :  { %86 = shalt.err (!%p83_p4)
}
  0x9c   :  { %s87_s19 = scalar_lea.hbm %s135_s1, 16 }
  0x9d   :  { %p88_p5 = scmp.ne.s32.totalorder %s135_s1, %s87_s19  ;;  %p91_p6 = scmp.lt.u32.totalorder %s87_s19, %s135_s1 }
  0x9f   :  { %p93_p7 = pnand %p91_p6, %p88_p5 }
  0xa1   :  { %96 = shalt.err (!%p93_p7)
}
  0xa2   :  { %69 = dma.vmem_to_hbm [thread:$0]  %s67_s14, 16, %s135_s1, [#allocation3]  }
  0xa3   :  { %97 = dma.done.wait [#allocation3], 16  }
  0xa4   :  { %98 = vsyncadd [#allocation3], 4294967280 }
  0xa5   :  { %73 = vsyncpa [#allocation3], 1 }

</bundles_post_ra>
